<compile_context>
chip_gen: v7x
topology: tpu7x:2x2x1
jax: 0.10.0
libtpu: 0.0.40
codegen_flags: <defaults>
</compile_context>

<pallas_src>
import functools

import jax
import jax.numpy as jnp
from jax.experimental import pallas as pl
from jax.experimental.pallas import tpu as pltpu


# ---------------------------------------------------------------------------
# Kernel
# ---------------------------------------------------------------------------
def fc_kernel(x_ref, w1_ref, b1_ref, w2_ref, b2_ref, o_ref):
    # Layer 1: Linear + ReLU (dropout = identity at inference). bf16 MXU feeds, f32 acc.
    x = x_ref[...].astype(jnp.bfloat16)
    h = jnp.dot(x, w1_ref[...], preferred_element_type=jnp.float32)
    h = jnp.maximum(h + b1_ref[...], 0.0)
    # Layer 2: Linear + ReLU on the lane-dense (padded-to-128) output width.
    o = jnp.dot(h.astype(jnp.bfloat16), w2_ref[...], preferred_element_type=jnp.float32)
    o = jnp.maximum(o + b2_ref[...], 0.0)
    o_ref[...] = o.astype(o_ref.dtype)


# ---------------------------------------------------------------------------
# One-time (import-time) probe: does this Pallas version accept pl.Buffered(1)
# on a constant-index BlockSpec?  Decided once, never in the forward path.
# ---------------------------------------------------------------------------
def _probe_single_buffer():
    try:
        const_spec = pl.BlockSpec((8, 128), lambda i: (0, 0), pipeline_mode=pl.Buffered(1))

        def _k(a_ref, c_ref, o_ref):
            o_ref[...] = a_ref[...] + c_ref[...]

        fn = pl.pallas_call(
            _k,
            out_shape=jax.ShapeDtypeStruct((8, 128), jnp.float32),
            grid_spec=pltpu.PrefetchScalarGridSpec(
                num_scalar_prefetch=0,
                grid=(1,),
                in_specs=[pl.BlockSpec((8, 128), lambda i: (0, 0)), const_spec],
                out_specs=pl.BlockSpec((8, 128), lambda i: (0, 0)),
            ),
        )
        z = jnp.zeros((8, 128), jnp.float32)
        jax.jit(fn).lower(z, z).compile()
        return True
    except Exception:
        return False


_SINGLE_BUFFER_WEIGHTS = _probe_single_buffer()


# ---------------------------------------------------------------------------
# Tiling / call construction
# ---------------------------------------------------------------------------
def _pick_tile(B, requested):
    # Multiple of 16 (bf16 sublane packing), at most 512, and no bigger than the
    # (rounded-up) batch.  Keep >=4 grid steps when possible (>=2 per v7x core) so
    # the x-tile DMA / output writeback hide under the MXU work, but never below 128.
    t = max(16, (min(requested, 512) // 16) * 16)
    t = min(t, max(16, pl.cdiv(B, 16) * 16))
    while t > 128 and pl.cdiv(B, t) < 4:
        t //= 2
    return t


def _build_call(B_pad, in_dim, hidden, out_pad, tile_m, out_dtype):
    const_kwargs = {"pipeline_mode": pl.Buffered(1)} if _SINGLE_BUFFER_WEIGHTS else {}
    out_itemsize = jnp.dtype(out_dtype).itemsize

    # Scheduler hint (bf16 weights, f32 x / output).
    flops = 2 * B_pad * (in_dim * hidden + hidden * out_pad)
    bytes_accessed = (B_pad * in_dim * 4
                      + 2 * (in_dim * hidden + hidden * out_pad)
                      + 4 * (hidden + out_pad)
                      + B_pad * out_pad * out_itemsize)
    cost = pl.CostEstimate(flops=flops, transcendentals=0, bytes_accessed=bytes_accessed)

    # VMEM budget: double-buffered x/out tiles, weights counted once when single-buffered,
    # f32 intermediates; 1.5x headroom, capped well below v7x's 64 MiB physical VMEM.
    w_bufs = 1 if _SINGLE_BUFFER_WEIGHTS else 2
    need = (2 * tile_m * in_dim * 4 + 2 * tile_m * out_pad * out_itemsize
            + w_bufs * 2 * (in_dim * hidden + hidden * out_pad)
            + w_bufs * 4 * (hidden + out_pad)
            + tile_m * hidden * 4 + tile_m * out_pad * 4)
    vmem_limit = int(min(48 * 1024 * 1024, max(16 * 1024 * 1024, int(1.5 * need))))

    # TODO(synk): for layers whose bf16 weights no longer fit VMEM (v7x: 64 MiB), add a
    # K-tiled reduction axis ("arbitrary") with an f32 VMEM accumulator instead of
    # keeping W1/W2 fully resident.
    return pl.pallas_call(
        fc_kernel,
        out_shape=jax.ShapeDtypeStruct((B_pad, out_pad), out_dtype),
        grid_spec=pltpu.PrefetchScalarGridSpec(
            num_scalar_prefetch=0,
            grid=(B_pad // tile_m,),
            in_specs=[
                pl.BlockSpec((tile_m, in_dim), lambda i: (i, 0)),                   # x tile
                pl.BlockSpec((in_dim, hidden), lambda i: (0, 0), **const_kwargs),   # W1 (bf16)
                pl.BlockSpec((1, hidden), lambda i: (0, 0), **const_kwargs),        # b1 (f32)
                pl.BlockSpec((hidden, out_pad), lambda i: (0, 0), **const_kwargs),  # W2 (bf16, padded N)
                pl.BlockSpec((1, out_pad), lambda i: (0, 0), **const_kwargs),       # b2 (f32, padded N)
            ],
            out_specs=pl.BlockSpec((tile_m, out_pad), lambda i: (i, 0)),
        ),
        compiler_params=pltpu.CompilerParams(
            dimension_semantics=("parallel",),  # batch axis is embarrassingly parallel
            vmem_limit_bytes=vmem_limit,
        ),
        cost_estimate=cost,
    )


@functools.partial(jax.jit, static_argnums=(5, 6))
def _fc_forward(x, w1b, b1, w2b, b2, out_dim, tile_m):
    B, in_dim = x.shape
    hidden = w1b.shape[1]
    out_pad = w2b.shape[1]

    tm = _pick_tile(B, tile_m)
    B_pad = pl.cdiv(B, tm) * tm
    xp = jnp.pad(x, ((0, B_pad - B), (0, 0))) if B_pad != B else x

    call = _build_call(B_pad, in_dim, hidden, out_pad, tm, x.dtype)
    out = call(xp, w1b, b1, w2b, b2)
    # Slice stays inside the same jit (fusable) rather than a standalone post-op.
    return out[:B, :out_dim]


# ---------------------------------------------------------------------------
# Public API: one-time parameter prep + jitted forward
# ---------------------------------------------------------------------------
def make_fc(w1, b1, w2, b2, *, tile_m=256):
    """Prepare parameters once (bf16 cast, lane-dense padding) and return a jitted forward."""
    in_dim, hidden = w1.shape
    out_dim = w2.shape[1]
    out_pad = max(128, pl.cdiv(out_dim, 128) * 128)

    w1b = w1.astype(jnp.bfloat16)
    w2b = jnp.pad(w2, ((0, 0), (0, out_pad - out_dim))).astype(jnp.bfloat16)
    b1f = jnp.asarray(b1, jnp.float32).reshape(1, hidden)
    b2f = jnp.pad(jnp.asarray(b2, jnp.float32).reshape(1, out_dim),
                  ((0, 0), (0, out_pad - out_dim)))

    def forward(x):
        return _fc_forward(x, w1b, b1f, w2b, b2f, out_dim, tile_m)

    return forward


def init_params(key, in_dim, hidden, out_dim, dtype=jnp.float32):
    # Deterministic PyTorch-style init: U(-1/sqrt(fan_in), 1/sqrt(fan_in))
    k1, k2, k3, k4 = jax.random.split(key, 4)
    bound1 = 1.0 / (in_dim ** 0.5)
    bound2 = 1.0 / (hidden ** 0.5)
    w1 = jax.random.uniform(k1, (in_dim, hidden), dtype, -bound1, bound1)
    b1 = jax.random.uniform(k2, (1, hidden), dtype, -bound1, bound1)
    w2 = jax.random.uniform(k3, (hidden, out_dim), dtype, -bound2, bound2)
    b2 = jax.random.uniform(k4, (1, out_dim), dtype, -bound2, bound2)
    return w1, b1, w2, b2


if __name__ == "__main__":
    # Small shapes consistent with the module (in_dim -> dim_feedforward -> out_dim=7).
    # B=512 with the auto-picked tile_m=128 gives a 4-step parallel grid
    # (>=2 steps per TensorCore on v7x so DMAs pipeline behind the MXU).
    B, IN_DIM, HIDDEN, OUT_DIM = 512, 256, 512, 7

    key = jax.random.PRNGKey(0)
    kx, kp = jax.random.split(key)
    x = jax.random.normal(kx, (B, IN_DIM), jnp.float32)
    w1, b1, w2, b2 = init_params(kp, IN_DIM, HIDDEN, OUT_DIM)

    fc = make_fc(w1, b1, w2, b2, tile_m=256)
    out = jax.block_until_ready(fc(x))

    # Reference 1: same bf16-feed / f32-accumulate numerics in plain JAX (tight tolerance).
    hb = jnp.maximum(jnp.dot(x.astype(jnp.bfloat16), w1.astype(jnp.bfloat16),
                             preferred_element_type=jnp.float32) + b1, 0.0)
    ref_bf16 = jnp.maximum(jnp.dot(hb.astype(jnp.bfloat16), w2.astype(jnp.bfloat16),
                                   preferred_element_type=jnp.float32) + b2, 0.0)
    # Reference 2: full-f32 module semantics (loose tolerance covers bf16 MXU rounding).
    ref_f32 = jnp.maximum(jnp.maximum(x @ w1 + b1, 0.0) @ w2 + b2, 0.0)

    assert out.shape == (B, OUT_DIM)
    assert jnp.allclose(out, ref_bf16, atol=2e-3, rtol=2e-3)
    assert jnp.allclose(out, ref_f32, atol=5e-2, rtol=5e-2)

    print("KERNEL_OK")
</pallas_src>

<mosaic_0001>
module attributes {stable_mosaic.version = 11 : i64} {
  func.func @fc_kernel(%arg0: i32, %arg1: memref<128x256xf32, #tpu.memory_space<vmem>>, %arg2: memref<256x512xbf16, #tpu.memory_space<vmem>>, %arg3: memref<1x512xf32, #tpu.memory_space<vmem>>, %arg4: memref<512x128xbf16, #tpu.memory_space<vmem>>, %arg5: memref<1x128xf32, #tpu.memory_space<vmem>>, %arg6: memref<128x128xf32, #tpu.memory_space<vmem>>) attributes {dimension_semantics = [#tpu.dimension_semantics<parallel>], iteration_bounds = array<i64: 4>, scalar_prefetch = 0 : i64, scratch_operands = 0 : i64, tpu.core_type = #tpu.core_type<tc>, window_params = [{transform_indices = @transform_0, window_bounds = array<i64: 128, 256>}, {pipeline_mode = #tpu.pipeline_mode<synchronous>, transform_indices = @transform_1, window_bounds = array<i64: 256, 512>}, {pipeline_mode = #tpu.pipeline_mode<synchronous>, transform_indices = @transform_2, window_bounds = array<i64: 1, 512>}, {pipeline_mode = #tpu.pipeline_mode<synchronous>, transform_indices = @transform_3, window_bounds = array<i64: 512, 128>}, {pipeline_mode = #tpu.pipeline_mode<synchronous>, transform_indices = @transform_4, window_bounds = array<i64: 1, 128>}, {transform_indices = @transform_5, window_bounds = array<i64: 128, 128>}]} {
    %c0 = arith.constant 0 : index
    %c0_0 = arith.constant 0 : index
    %0 = vector.load %arg1[%c0, %c0_0] : memref<128x256xf32, #tpu.memory_space<vmem>>, vector<128x256xf32>
    %1 = arith.truncf %0 : vector<128x256xf32> to vector<128x256xbf16>
    %c0_1 = arith.constant 0 : index
    %c0_2 = arith.constant 0 : index
    %2 = vector.load %arg2[%c0_1, %c0_2] : memref<256x512xbf16, #tpu.memory_space<vmem>>, vector<256x512xbf16>
    %cst = arith.constant dense<0.000000e+00> : vector<128x512xf32>
    %3 = tpu.matmul %1, %2, %cst {dimension_numbers = #tpu.dot_dimension_numbers<[1], [0], [0], [1], [0, 0, 1, 1], [], []>} : vector<128x256xbf16>, vector<256x512xbf16>, vector<128x512xf32> -> vector<128x512xf32>
    %c0_3 = arith.constant 0 : index
    %c0_4 = arith.constant 0 : index
    %4 = vector.load %arg3[%c0_3, %c0_4] : memref<1x512xf32, #tpu.memory_space<vmem>>, vector<1x512xf32>
    %5 = vector.broadcast %4 : vector<1x512xf32> to vector<128x512xf32>
    %6 = arith.addf %3, %5 : vector<128x512xf32>
    %cst_5 = arith.constant 0.000000e+00 : f32
    %7 = vector.broadcast %cst_5 : f32 to vector<128x512xf32>
    %8 = arith.maximumf %6, %7 : vector<128x512xf32>
    %9 = arith.truncf %8 : vector<128x512xf32> to vector<128x512xbf16>
    %c0_6 = arith.constant 0 : index
    %c0_7 = arith.constant 0 : index
    %10 = vector.load %arg4[%c0_6, %c0_7] : memref<512x128xbf16, #tpu.memory_space<vmem>>, vector<512x128xbf16>
    %cst_8 = arith.constant dense<0.000000e+00> : vector<128x128xf32>
    %11 = tpu.matmul %9, %10, %cst_8 {dimension_numbers = #tpu.dot_dimension_numbers<[1], [0], [0], [1], [0, 0, 1, 1], [], []>} : vector<128x512xbf16>, vector<512x128xbf16>, vector<128x128xf32> -> vector<128x128xf32>
    %c0_9 = arith.constant 0 : index
    %c0_10 = arith.constant 0 : index
    %12 = vector.load %arg5[%c0_9, %c0_10] : memref<1x128xf32, #tpu.memory_space<vmem>>, vector<1x128xf32>
    %13 = vector.broadcast %12 : vector<1x128xf32> to vector<128x128xf32>
    %14 = arith.addf %11, %13 : vector<128x128xf32>
    %cst_11 = arith.constant 0.000000e+00 : f32
    %15 = vector.broadcast %cst_11 : f32 to vector<128x128xf32>
    %16 = arith.maximumf %14, %15 : vector<128x128xf32>
    %c0_12 = arith.constant 0 : index
    %c0_13 = arith.constant 0 : index
    %17 = vector.load %arg6[%c0_12, %c0_13] : memref<128x128xf32, #tpu.memory_space<vmem>>, vector<128x128xf32>
    tpu.vector_store %arg6[%c0_12, %c0_13], %16 {strides = array<i32>} : memref<128x128xf32, #tpu.memory_space<vmem>>, vector<128x128xf32>,
    return
  }
  func.func @transform_0(%arg0: i32) -> (i32, i32) {
    %c0_i32 = arith.constant 0 : i32
    %c0_i32_0 = arith.constant 0 : i32
    return %arg0, %c0_i32 : i32, i32
  }
  func.func @transform_1(%arg0: i32) -> (i32, i32) {
    %c0_i32 = arith.constant 0 : i32
    %c0_i32_0 = arith.constant 0 : i32
    %c0_i32_1 = arith.constant 0 : i32
    return %c0_i32, %c0_i32_0 : i32, i32
  }
  func.func @transform_2(%arg0: i32) -> (i32, i32) {
    %c0_i32 = arith.constant 0 : i32
    %c0_i32_0 = arith.constant 0 : i32
    %c0_i32_1 = arith.constant 0 : i32
    return %c0_i32, %c0_i32_0 : i32, i32
  }
  func.func @transform_3(%arg0: i32) -> (i32, i32) {
    %c0_i32 = arith.constant 0 : i32
    %c0_i32_0 = arith.constant 0 : i32
    %c0_i32_1 = arith.constant 0 : i32
    return %c0_i32, %c0_i32_0 : i32, i32
  }
  func.func @transform_4(%arg0: i32) -> (i32, i32) {
    %c0_i32 = arith.constant 0 : i32
    %c0_i32_0 = arith.constant 0 : i32
    %c0_i32_1 = arith.constant 0 : i32
    return %c0_i32, %c0_i32_0 : i32, i32
  }
  func.func @transform_5(%arg0: i32) -> (i32, i32) {
    %c0_i32 = arith.constant 0 : i32
    %c0_i32_0 = arith.constant 0 : i32
    return %arg0, %c0_i32 : i32, i32
  }
}

</mosaic_0001>

<bundles_post_ra>
// kernel: _fc_forward.1
= control target key start
LH: loop header
LB: loop body
LE: loop exit
PB: predicated region body
PF: predicated region fallthrough
CT: control target
= control target key end

     0   :  { %10 = vsyncpa [#allocation3], 0  ;;  %s2561_s0 = inlined_call_operand.hbm [shape: f32[512,256], index: 0, kind: input, shape index: {}]   ;;  %s2562_s1 = inlined_call_operand.hbm [shape: bf16[256,512], index: 1, kind: input, shape index: {}]   ;;  %s2563_s2 = inlined_call_operand.vmem [shape: f32[1,512], index: 2, kind: input, shape index: {}]   ;;  %s2564_s3 = inlined_call_operand.hbm [shape: bf16[512,128], index: 3, kind: input, shape index: {}]   ;;  %s2565_s4 = inlined_call_operand.vmem [shape: f32[1,128], index: 4, kind: input, shape index: {}]   ;;  %s2566_s5 = inlined_call_operand.vmem [shape: f32[512,128], index: 5, kind: output, shape index: {}]  }
   0x1   :  { %12 = vsyncpa [#allocation3 + $0x1], 0 }
   0x2   :  { %13 = vsyncpa [#allocation5], 0  ;;  %s2229_s18 = smov 0   ;;  %s2231_s19 = smov 0  }
   0x3   :  { %s2233_s20 = smov 0   ;;  %s2235_s21 = smov 0  }
   0x4 LB: > { %s1629_s22 = sadd.s32 4294967295, %s2190_s21   ;;  %p39_p0 = scmp.ne.s32.totalorder %s2182_s19, %s2178_s18  ;;  %s2190_s21 = sphi %s2235_s21, %s2582_s21   ;;  %s2186_s20 = sphi %s2233_s20, %s2581_s20   ;;  %s2182_s19 = sphi %s2231_s19, %s2580_s19   ;;  %s2178_s18 = sphi %s2229_s18, %s2579_s18  }
   0x5   : > { %p2251_p1 = scmp.eq.s32.totalorder %s1629_s22, 0  ;;  %p1631_p2 = scmp.ge.s32.totalorder %s2190_s21, 1 }
   0x6   : > { %p160_p3 = scmp.lt.s32.totalorder %s2190_s21, 5  ;;  %s2192_s26 = smov [#allocation4]  }
   0x7   : > { %s2571_s23 = scalar_select %p2251_p1, 1, 0 }
   0x8   : > { %p2259_p4 = por %p2251_p1, %p39_p0  ;;  %p2263_p5 = pnand %p1631_p2, %p160_p3 }
   0x9   : > { %s172_s27 = sshll.u32 %s2192_s26, 4  ;;  %s2193_s29 = smov [#allocation6]   ;;  %s173_s27 = int_to_ptr.vmem [resolvable:$true] %s172_s27 }
   0xa   : > { %s2572_s24 = scalar_select %p2259_p4, 1, 0 }
   0xb   : > { %s2573_s25 = scalar_select %p2263_p5, 1, 0 }
   0xc   : > { %p1884_p6 = pneg %p2263_p5  ;;  %s188_s30 = sshll.u32 %s2193_s29, 4  ;;  %s2275_s30 = int_to_ptr.vmem [resolvable:$true] %s188_s30 }
   0xd   : > { %s2066_s8 = scalar_lea.hbm %s2562_s1, 8192 }
   0xe   : > { %p2271_p7 = pnand %p1884_p6, %p2251_p1  ;;  %p2067_p8 = scmp.ne.s32.totalorder %s2562_s1, %s2066_s8 }
   0xf   : > { %p2073_p12 = scmp.lt.u32.totalorder %s2066_s8, %s2562_s1 }
  0x10   : > { %p2068_p9 = pneg %p2271_p7 }
  0x12   : > { %p2069_p10 = pnand %p2068_p9, %p2067_p8 }
  0x14   : > { %p2070_p11 = pneg %p2069_p10 }
  0x16   : > { %p2075_p13 = pnand %p2073_p12, %p2070_p11 }
  0x18   : > { %2078 = shalt.err (!%p2075_p13)
}
  0x19   : > { %s2079_s13 = scalar_lea.vmem %s173_s27, 8192  ;;  %p2087_p6 = scmp.lt.s32.totalorder %s173_s27, %s173_s27 }
  0x1a   : > { %p2080_p0 = scmp.ne.s32.totalorder %s173_s27, %s2079_s13  ;;  %p2088_p1 = scmp.lt.s32.totalorder %s2079_s13, %s2079_s13 }
  0x1c   : > { %p2082_p2 = pnand %p2080_p0, %p2068_p9  ;;  %p2089_p4 = por %p2088_p1, %p2087_p6 }
  0x1e   : > { %p2083_p3 = pneg %p2082_p2 }
  0x20   : > { %p2090_p5 = pnand %p2089_p4, %p2083_p3 }
  0x22   : > { %2093 = shalt.err (!%p2090_p5)
}
  0x23   : > { %s2194_s14 = smov 256   ;;  %s2195_s15 = smov 16  }
  0x24   : > { %1887 = dma.hbm_to_vmem [thread:$0]  (!%p2271_p7), %s2562_s1, 8192, %s173_s27, [#allocation5], %s2194_s14, %s2194_s14, %s2195_s15  }
  0x25   : > { %s2094_s29 = scalar_lea.hbm %s2564_s3, 4096 }
  0x26   : > { %p2095_p1 = scmp.ne.s32.totalorder %s2564_s3, %s2094_s29  ;;  %p2101_p8 = scmp.lt.u32.totalorder %s2094_s29, %s2564_s3 }
  0x28   : > { %p2097_p4 = pnand %p2095_p1, %p2068_p9 }
  0x2a   : > { %p2098_p5 = pneg %p2097_p4 }
  0x2c   : > { %p2103_p10 = pnand %p2101_p8, %p2098_p5 }
  0x2e   : > { %2106 = shalt.err (!%p2103_p10)
}
  0x2f   : > { %s2107_s27 = scalar_lea.vmem %s2275_s30, 4096  ;;  %p2115_p0 = scmp.lt.s32.totalorder %s2275_s30, %s2275_s30 }
  0x30   : > { %p2108_p11 = scmp.ne.s32.totalorder %s2275_s30, %s2107_s27  ;;  %p2116_p2 = scmp.lt.s32.totalorder %s2107_s27, %s2107_s27 }
  0x32   : > { %p2110_p12 = pnand %p2108_p11, %p2068_p9  ;;  %p2117_p3 = por %p2116_p2, %p2115_p0 }
  0x34   : > { %p2111_p13 = pneg %p2110_p12 }
  0x36   : > { %p2118_p6 = pnand %p2117_p3, %p2111_p13 }
  0x38   : > { %2121 = shalt.err (!%p2118_p6)
}
  0x39   : > { %s2196_s10 = smov 64   ;;  %s2197_s11 = smov 4  }
  0x3a   : > { %1890 = dma.hbm_to_vmem [thread:$0]  (!%p2271_p7), %s2564_s3, 4096, %s2275_s30, [#allocation5], %s2196_s10, %s2196_s10, %s2197_s11  }
  0x3b   : > { %s2328_s16 = sadd.s32 1, %s2190_s21   ;;  %s26_s18 = sadd.s32 1, %s2186_s20 }
  0x3c   : > { %s23_s17 = ssub.s32 %s2190_s21, %s2328_s16  ;;  %p33_p1 = scmp.ne.s32.totalorder %s2186_s20, %s2182_s19 }
  0x3d   : > { %p24_p9 = scmp.eq.s32.totalorder %s23_s17, 0  ;;  %p34_p4 = scmp.eq.s32.totalorder %s2190_s21, 0 }
  0x3e   : > { %p1897_p8 = scmp.lt.s32.totalorder %s2190_s21, 4  ;;  %s205_s29 = sand.u32 1, %s2186_s20  }
  0x3f   : > { %s2337_s26 = scalar_select %p24_p9, %s2186_s20, %s26_s18  }
  0x40   : > { %p35_p5 = por %p34_p4, %p33_p1  ;;  %s1745_s6 = sshll.u32 %s2190_s21, 12 }
  0x41   : > { %s1635_s7 = sshll.u32 %s205_s29, 8  ;;  %s2345_s9 = scalar_lea.hbm %s2561_s0, %s1745_s6 }
  0x42   : > { %s209_s30 = scalar_lea.vmem [#allocation2], %s1635_s7  ;;  %p2347_p7 = pnand %p1897_p8, %p35_p5 }
  0x43   : > { %s217_s27 = sshll.u32 %s209_s30, 4  ;;  %s2353_s11 = scalar_lea.sflag [#allocation3], %s205_s29  ;;  %s2351_s27 = int_to_ptr.vmem [resolvable:$true] %s217_s27 }
  0x44   : > { %s2122_s12 = scalar_lea.hbm %s2345_s9, 4096  ;;  %p2124_p11 = pneg %p2347_p7 }
  0x45   : > { %p2123_p10 = scmp.ne.s32.totalorder %s2345_s9, %s2122_s12  ;;  %s2127_s18 = scalar_lea.hbm %s2561_s0, 16384 }
  0x46   : > { %p2128_p0 = scmp.lt.u32.totalorder %s2345_s9, %s2561_s0  ;;  %p2129_p2 = scmp.lt.u32.totalorder %s2127_s18, %s2122_s12 }
  0x47   : > { %p2125_p12 = pnand %p2124_p11, %p2123_p10  ;;  %p2131_p6 = scmp.lt.u32.totalorder %s2122_s12, %s2345_s9 }
  0x48   : > { %p2130_p3 = por %p2129_p2, %p2128_p0 }
  0x49   : > { %p2126_p13 = pneg %p2125_p12 }
  0x4a   : > { %p2132_p9 = por %p2131_p6, %p2130_p3 }
  0x4c   : > { %p2133_p1 = pnand %p2132_p9, %p2126_p13 }
  0x4e   : > { %2136 = shalt.err (!%p2133_p1)
}
  0x4f   : > { %s2137_s29 = scalar_lea.vmem %s2351_s27, 4096  ;;  %s2198_s28 = smov [#allocation2]  }
  0x50   : > { %p2138_p4 = scmp.ne.s32.totalorder %s2351_s27, %s2137_s29  ;;  %s2142_s8 = sshll.u32 %s2198_s28, 4  ;;  %s2143_s8 = int_to_ptr.vmem [resolvable:$false] %s2142_s8 }
  0x51   : > { %s2144_s30 = scalar_lea.vmem %s2143_s8, 8192  ;;  %p2145_p10 = scmp.lt.s32.totalorder %s2351_s27, %s2143_s8 }
  0x52   : > { %p2140_p5 = pnand %p2138_p4, %p2124_p11  ;;  %p2146_p12 = scmp.lt.s32.totalorder %s2144_s30, %s2137_s29 }
  0x54   : > { %p2141_p8 = pneg %p2140_p5  ;;  %p2147_p0 = por %p2146_p12, %p2145_p10 }
  0x56   : > { %p2148_p2 = pnand %p2147_p0, %p2141_p8 }
  0x58   : > { %2151 = shalt.err (!%p2148_p2)
}
  0x59   : > { %1894 = dma.hbm_to_vmem [thread:$0]  (!%p2347_p7), %s2345_s9, 4096, %s2351_s27, %s2353_s11, %s2194_s14, %s2194_s14, %s2195_s15  }
  0x5a   : > { %p2576_p11 = scmp.ne.s32.totalorder %s2573_s25, 0 }
  0x5b   : > { %s231_s12 = sand.u32 (!%p2576_p11), 1, %s2182_s19   ;;  %p2577_p13 = scmp.ne.s32.totalorder (!%p2576_p11), %s2572_s24, 0 }
  0x5c   : > { %229 = sbr.rel (%p2576_p11) target bundleno = 670 (0x29e), region = 40  ;;  %s1640_s13 = sshll.u32 (!%p2576_p11), %s231_s12, 8 }
  0x5d   : > { %s232_s17 = scalar_lea.sflag (!%p2576_p11), [#allocation3], %s231_s12  ;;  %s2387_s18 = scalar_lea.vmem (!%p2576_p11), [#allocation2], %s1640_s13 }
  0x63   : > { %2169 = dma.done.wait (%p2577_p13), %s232_s17, 4096  }
  0x64   : > { %2171 = vsyncadd (%p2577_p13), %s232_s17, 4294963200  ;;  %p2578_p3 = scmp.ne.s32.totalorder %s2571_s23, 0 }
  0x66   : > { %2173 = dma.done.wait (%p2578_p3), [#allocation5], 12288  }
  0x67   : > { %2175 = vsyncadd (%p2578_p3), [#allocation5], 4294955008  ;;  %v1938_v0 = vld [vmem:[#allocation4 + $0x4] ss:$16 sps:$4 sm:$0xff]   ;;  %v1940_v1 = vld [vmem:[#allocation4 + $0xc] ss:$16 sps:$4 sm:$0xff]  }
  0x68   : > { %732 = vmatprep.subr.bf16.mxu0 %v1938_v0  ;;  %v1942_v2 = vld [vmem:[#allocation4] ss:$16 sps:$4 sm:$0xff]   ;;  %v1943_v3 = vld [vmem:[#allocation4 + $0x8] ss:$16 sps:$4 sm:$0xff]   ;;  %845 = vmatprep.subr.bf16.mxu1 %v1940_v1  ;;  %v1944_v4 = vld [vmem:[#allocation4 + $0x24] ss:$16 sps:$4 sm:$0xff]  }
  0x69   : > { %733 = vmatpush1.bf16.msra.mxu0 %v1942_v2  ;;  %846 = vmatpush1.bf16.msra.mxu1 %v1943_v3  ;;  %v1946_v5 = vld [vmem:[#allocation4 + $0x2c] ss:$16 sps:$4 sm:$0xff]   ;;  %v1948_v6 = vld [vmem:[#allocation4 + $0x20] ss:$16 sps:$4 sm:$0xff]   ;;  %v1949_v7 = vld [vmem:[#allocation4 + $0x28] ss:$16 sps:$4 sm:$0xff]  }
  0x6a   : > { %734 = vmatprep.subr.bf16.mxu0 %v1944_v4  ;;  %847 = vmatprep.subr.bf16.mxu1 %v1946_v5  ;;  %v1950_v8 = vld [vmem:[#allocation4 + $0x44] ss:$16 sps:$4 sm:$0xff]   ;;  %v1952_v9 = vld [vmem:[#allocation4 + $0x4c] ss:$16 sps:$4 sm:$0xff]   ;;  %v1954_v10 = vld [vmem:[#allocation4 + $0x40] ss:$16 sps:$4 sm:$0xff]  }
  0x6b   : > { %v1955_v11 = vld [vmem:[#allocation4 + $0x48] ss:$16 sps:$4 sm:$0xff]   ;;  %v1956_v12 = vld [vmem:[#allocation4 + $0x64] ss:$16 sps:$4 sm:$0xff]   ;;  %v1958_v13 = vld [vmem:[#allocation4 + $0x6c] ss:$16 sps:$4 sm:$0xff]  }
  0x6c   : > { %v1960_v14 = vld [vmem:[#allocation4 + $0x60] ss:$16 sps:$4 sm:$0xff]   ;;  %v1961_v15 = vld [vmem:[#allocation4 + $0x68] ss:$16 sps:$4 sm:$0xff]   ;;  %v1962_v16 = vld [vmem:[#allocation4 + $0x84] ss:$16 sps:$4 sm:$0xff]  }
  0x6d   : > { %735 = vmatpush1.bf16.msra.mxu0 %v1948_v6  ;;  %848 = vmatpush1.bf16.msra.mxu1 %v1949_v7  ;;  %v1964_v17 = vld [vmem:[#allocation4 + $0x8c] ss:$16 sps:$4 sm:$0xff]   ;;  %v1966_v18 = vld [vmem:[#allocation4 + $0x80] ss:$16 sps:$4 sm:$0xff]   ;;  %v1967_v19 = vld [vmem:[#allocation4 + $0x88] ss:$16 sps:$4 sm:$0xff]  }
  0x6e   : > { %736 = vmatprep.subr.bf16.mxu0 %v1950_v8  ;;  %849 = vmatprep.subr.bf16.mxu1 %v1952_v9  ;;  %v1968_v20 = vld [vmem:[#allocation4 + $0xa4] ss:$16 sps:$4 sm:$0xff]   ;;  %v1970_v21 = vld [vmem:[#allocation4 + $0xac] ss:$16 sps:$4 sm:$0xff]   ;;  %v1972_v22 = vld [vmem:[#allocation4 + $0xa0] ss:$16 sps:$4 sm:$0xff]  }
  0x6f   : > { %v1973_v23 = vld [vmem:[#allocation4 + $0xa8] ss:$16 sps:$4 sm:$0xff]   ;;  %v1974_v24 = vld [vmem:[#allocation4 + $0xc4] ss:$16 sps:$4 sm:$0xff]   ;;  %v1976_v25 = vld [vmem:[#allocation4 + $0xcc] ss:$16 sps:$4 sm:$0xff]  }
  0x70   : > { %v1978_v26 = vld [vmem:[#allocation4 + $0xc0] ss:$16 sps:$4 sm:$0xff]   ;;  %v1979_v27 = vld [vmem:[#allocation4 + $0xc8] ss:$16 sps:$4 sm:$0xff]   ;;  %v1980_v28 = vld [vmem:[#allocation4 + $0xe4] ss:$16 sps:$4 sm:$0xff]  }
  0x71   : > { %737 = vmatpush1.bf16.msra.mxu0 %v1954_v10  ;;  %850 = vmatpush1.bf16.msra.mxu1 %v1955_v11  ;;  %v1982_v29 = vld [vmem:[#allocation4 + $0xec] ss:$16 sps:$4 sm:$0xff]   ;;  %v1984_v30 = vld [vmem:[#allocation4 + $0xe0] ss:$16 sps:$4 sm:$0xff]   ;;  %v1985_v31 = vld [vmem:[#allocation4 + $0xe8] ss:$16 sps:$4 sm:$0xff]  }
  0x72   : > { %738 = vmatprep.subr.bf16.mxu0 %v1956_v12  ;;  %851 = vmatprep.subr.bf16.mxu1 %v1958_v13  ;;  %v1986_v32 = vld [vmem:[#allocation4 + $0x104] ss:$16 sps:$4 sm:$0xff]   ;;  %v1988_v33 = vld [vmem:[#allocation4 + $0x10c] ss:$16 sps:$4 sm:$0xff]   ;;  %v1990_v34 = vld [vmem:[#allocation4 + $0x100] ss:$16 sps:$4 sm:$0xff]  }
  0x73   : > { %v1991_v35 = vld [vmem:[#allocation4 + $0x108] ss:$16 sps:$4 sm:$0xff]   ;;  %v1992_v36 = vld [vmem:[#allocation4 + $0x124] ss:$16 sps:$4 sm:$0xff]   ;;  %v1994_v37 = vld [vmem:[#allocation4 + $0x12c] ss:$16 sps:$4 sm:$0xff]  }
  0x74   : > { %v1996_v38 = vld [vmem:[#allocation4 + $0x120] ss:$16 sps:$4 sm:$0xff]   ;;  %v1997_v39 = vld [vmem:[#allocation4 + $0x128] ss:$16 sps:$4 sm:$0xff]   ;;  %v1998_v40 = vld [vmem:[#allocation4 + $0x144] ss:$16 sps:$4 sm:$0xff]  }
  0x75   : > { %739 = vmatpush1.bf16.msra.mxu0 %v1960_v14  ;;  %852 = vmatpush1.bf16.msra.mxu1 %v1961_v15  ;;  %v2000_v41 = vld [vmem:[#allocation4 + $0x14c] ss:$16 sps:$4 sm:$0xff]   ;;  %v2002_v42 = vld [vmem:[#allocation4 + $0x140] ss:$16 sps:$4 sm:$0xff]   ;;  %v2003_v43 = vld [vmem:[#allocation4 + $0x148] ss:$16 sps:$4 sm:$0xff]  }
  0x76   : > { %740 = vmatprep.subr.bf16.mxu0 %v1962_v16  ;;  %853 = vmatprep.subr.bf16.mxu1 %v1964_v17  ;;  %v2004_v44 = vld [vmem:[#allocation4 + $0x164] ss:$16 sps:$4 sm:$0xff]   ;;  %v2006_v45 = vld [vmem:[#allocation4 + $0x16c] ss:$16 sps:$4 sm:$0xff]   ;;  %v2008_v48 = vld [vmem:[#allocation4 + $0x160] ss:$16 sps:$4 sm:$0xff]  }
  0x77   : > { %v279_v46 = vld [vmem:[%s2387_s18 + $0x8] sm:$0xff]  ;;  %v281_v47 = vld [vmem:[%s2387_s18 + $0x18] sm:$0xff]  ;;  %v2010_v51 = vld [vmem:[#allocation4 + $0x184] ss:$16 sps:$4 sm:$0xff]   ;;  %s1643_s25 = sshll.u32 %s1629_s22, 4 }
  0x78   : > { %v2009_v49 = vld [vmem:[#allocation4 + $0x168] ss:$16 sps:$4 sm:$0xff]   ;;  %v311_v50 = vpack.c.bf16 %v281_v47, %v279_v46  ;;  %v2012_v52 = vld [vmem:[#allocation4 + $0x18c] ss:$16 sps:$4 sm:$0xff]   ;;  %v2014_v53 = vld [vmem:[#allocation4 + $0x180] ss:$16 sps:$4 sm:$0xff]  }
  0x79   : > { %741 = vmatpush1.bf16.msra.mxu0 %v1966_v18  ;;  %854 = vmatpush1.bf16.msra.mxu1 %v1967_v19  ;;  %v2015_v54 = vld [vmem:[#allocation4 + $0x188] ss:$16 sps:$4 sm:$0xff]   ;;  %v2016_v55 = vld [vmem:[#allocation4 + $0x1a4] ss:$16 sps:$4 sm:$0xff]   ;;  %v2018_v56 = vld [vmem:[#allocation4 + $0x1ac] ss:$16 sps:$4 sm:$0xff]  }
  0x7a   : > { %742 = vmatprep.subr.bf16.mxu0 %v1968_v20  ;;  %855 = vmatprep.subr.bf16.mxu1 %v1970_v21  ;;  %v2020_v57 = vld [vmem:[#allocation4 + $0x1a0] ss:$16 sps:$4 sm:$0xff]   ;;  %v2021_v58 = vld [vmem:[#allocation4 + $0x1a8] ss:$16 sps:$4 sm:$0xff]   ;;  %v2022_v59 = vld [vmem:[#allocation4 + $0x1c4] ss:$16 sps:$4 sm:$0xff]  }
  0x7b   : > { %764 = vmatprep.mubr.bf16.mxu0 %v311_v50  ;;  %877 = vmatprep.mubr.bf16.mxu1 %v311_v50  ;;  %v2024_v60 = vld [vmem:[#allocation4 + $0x1cc] ss:$16 sps:$4 sm:$0xff]   ;;  %v2026_v61 = vld [vmem:[#allocation4 + $0x1c0] ss:$16 sps:$4 sm:$0xff]   ;;  %v2027_v62 = vld [vmem:[#allocation4 + $0x1c8] ss:$16 sps:$4 sm:$0xff]  }
  0x7c   : > { %v2028_v63 = vld [vmem:[#allocation4 + $0x1e4] ss:$16 sps:$4 sm:$0xff]   ;;  %v2030_v0 = vld [vmem:[#allocation4 + $0x1ec] ss:$16 sps:$4 sm:$0xff]   ;;  %v2032_v1 = vld [vmem:[#allocation4 + $0x1e0] ss:$16 sps:$4 sm:$0xff]  }
  0x7d   : > { %743 = vmatpush1.bf16.msra.mxu0 %v1972_v22  ;;  %856 = vmatpush1.bf16.msra.mxu1 %v1973_v23  ;;  %v2033_v2 = vld [vmem:[#allocation4 + $0x1e8] ss:$16 sps:$4 sm:$0xff]   ;;  %v278_v3 = vld [vmem:[%s2387_s18] sm:$0xff]  ;;  %v280_v4 = vld [vmem:[%s2387_s18 + $0x10] sm:$0xff]  ;;  %p272_p7 = scmp.lt.s32.totalorder %s1643_s25, 63 }
  0x7e   : > { %744 = vmatprep.subr.bf16.mxu0 %v1974_v24  ;;  %857 = vmatprep.subr.bf16.mxu1 %v1976_v25  ;;  %v283_v5 = vld [vmem:[%s2387_s18 + $0x28] sm:$0xff]  ;;  %v285_v6 = vld [vmem:[%s2387_s18 + $0x38] sm:$0xff]  ;;  %v2034_v7 = vld [vmem:[#allocation6 + $0x40] sm:$0xff]   ;;  %v310_v9 = vpack.c.bf16 %v280_v4, %v278_v3 }
  0x7f   : > { %v2036_v8 = vld [vmem:[#allocation6 + $0xc0] sm:$0xff]   ;;  %v313_v11 = vpack.c.bf16 %v285_v6, %v283_v5  ;;  %v2038_v13 = vld [vmem:[#allocation6 + $0x48] sm:$0xff]   ;;  %v284_v15 = vld [vmem:[%s2387_s18 + $0x30] sm:$0xff]  ;;  %s2584_s25 = smov (!%p272_p7, %s1643_s25), 63 }
  0x80   : > { %v2035_v10 = vld [vmem:[#allocation6] sm:$0xff]   ;;  %v2040_v16 = vld [vmem:[#allocation6 + $0xc8] sm:$0xff]   ;;  %v289_v18 = vld [vmem:[%s2387_s18 + $0x58] sm:$0xff]  ;;  %s1644_s21 = sshll.u32 %s2584_s25, 3 }
  0x81   : > { %745 = vmatpush1.bf16.msra.mxu0 %v1978_v26  ;;  %858 = vmatpush1.bf16.msra.mxu1 %v1979_v27  ;;  %v2037_v12 = vld [vmem:[#allocation6 + $0x80] sm:$0xff]   ;;  %v287_v17 = vld [vmem:[%s2387_s18 + $0x48] sm:$0xff]  ;;  %v2042_v21 = vld [vmem:[#allocation6 + $0x50] sm:$0xff]   ;;  %s2516_s27 = scalar_lea.vmem %s2566_s5, %s1644_s21 }
  0x82   : > { %746 = vmatprep.subr.bf16.mxu0 %v1980_v28  ;;  %859 = vmatprep.subr.bf16.mxu1 %v1982_v29  ;;  %v282_v14 = vld [vmem:[%s2387_s18 + $0x20] sm:$0xff]  ;;  %v2039_v19 = vld [vmem:[#allocation6 + $0x8] sm:$0xff]   ;;  %v2044_v22 = vld [vmem:[#allocation6 + $0xd0] sm:$0xff]   ;;  %v315_v25 = vpack.c.bf16 %v289_v18, %v287_v17 }
  0x83   : > { %v2041_v20 = vld [vmem:[#allocation6 + $0x88] sm:$0xff]   ;;  %v312_v23 = vpack.c.bf16 %v284_v15, %v282_v14  ;;  %v2043_v24 = vld [vmem:[#allocation6 + $0x10] sm:$0xff]   ;;  %v2046_v27 = vld [vmem:[#allocation6 + $0x58] sm:$0xff]  }
  0x84   : > { %v2045_v26 = vld [vmem:[#allocation6 + $0x90] sm:$0xff]   ;;  %v286_v28 = vld [vmem:[%s2387_s18 + $0x40] sm:$0xff]  ;;  %v297_v46 = vld [vmem:[%s2387_s18 + $0x98] sm:$0xff] }
  0x85   : > { %747 = vmatpush1.bf16.msra.mxu0 %v1984_v30  ;;  %860 = vmatpush1.bf16.msra.mxu1 %v1985_v31  ;;  %v288_v29 = vld [vmem:[%s2387_s18 + $0x50] sm:$0xff]  ;;  %v2048_v30 = vld [vmem:[#allocation6 + $0xd8] sm:$0xff]   ;;  %v291_v31 = vld [vmem:[%s2387_s18 + $0x68] sm:$0xff] }
  0x86   : > { %748 = vmatprep.subr.bf16.mxu0 %v1986_v32  ;;  %861 = vmatprep.subr.bf16.mxu1 %v1988_v33  ;;  %v293_v32 = vld [vmem:[%s2387_s18 + $0x78] sm:$0xff]  ;;  %v2055_v47 = vld [vmem:[#allocation6 + $0x28] sm:$0xff]   ;;  %v2060_v50 = vld [vmem:[#allocation6 + $0xf0] sm:$0xff]  }
  0x87   : > { %v2047_v33 = vld [vmem:[#allocation6 + $0x18] sm:$0xff]   ;;  %v302_v3 = vld [vmem:[%s2387_s18 + $0xc0] sm:$0xff]  ;;  %v304_v4 = vld [vmem:[%s2387_s18 + $0xd0] sm:$0xff] }
  0x88   : > { %v307_v5 = vld [vmem:[%s2387_s18 + $0xe8] sm:$0xff]  ;;  %v309_v6 = vld [vmem:[%s2387_s18 + $0xf8] sm:$0xff] }
  0x89   : > { %749 = vmatpush1.bf16.msra.mxu0 %v1990_v34  ;;  %862 = vmatpush1.bf16.msra.mxu1 %v1991_v35  ;;  %v2049_v34 = vld [vmem:[#allocation6 + $0x98] sm:$0xff]   ;;  %v2050_v35 = vld [vmem:[#allocation6 + $0x60] sm:$0xff]  }
  0x8a   : > { %750 = vmatprep.subr.bf16.mxu0 %v1992_v36  ;;  %863 = vmatprep.subr.bf16.mxu1 %v1994_v37  ;;  %v2052_v36 = vld [vmem:[#allocation6 + $0xe0] sm:$0xff]   ;;  %v314_v37 = vpack.c.bf16 %v288_v29, %v286_v28  ;;  %v2063_v14 = vld [vmem:[#allocation6 + $0x38] sm:$0xff]  }
  0x8b   : > { %v2065_v15 = vld [vmem:[#allocation6 + $0xb8] sm:$0xff]  }
  0x8d   : > { %751 = vmatpush1.bf16.msra.mxu0 %v1996_v38  ;;  %864 = vmatpush1.bf16.msra.mxu1 %v1997_v39  ;;  %v2051_v38 = vld [vmem:[#allocation6 + $0x20] sm:$0xff]   ;;  %v317_v39 = vpack.c.bf16 %v293_v32, %v291_v31 }
  0x8e   : > { %752 = vmatprep.subr.bf16.mxu0 %v1998_v40  ;;  %865 = vmatprep.subr.bf16.mxu1 %v2000_v41  ;;  %v2053_v40 = vld [vmem:[#allocation6 + $0xa0] sm:$0xff]   ;;  %v2054_v41 = vld [vmem:[#allocation6 + $0x68] sm:$0xff]  }
  0x91   : > { %753 = vmatpush1.bf16.msra.mxu0 %v2002_v42  ;;  %866 = vmatpush1.bf16.msra.mxu1 %v2003_v43  ;;  %v2056_v42 = vld [vmem:[#allocation6 + $0xe8] sm:$0xff]   ;;  %v290_v43 = vld [vmem:[%s2387_s18 + $0x60] sm:$0xff] }
  0x92   : > { %754 = vmatprep.subr.bf16.mxu0 %v2004_v44  ;;  %867 = vmatprep.subr.bf16.mxu1 %v2006_v45  ;;  %v292_v44 = vld [vmem:[%s2387_s18 + $0x70] sm:$0xff]  ;;  %v295_v45 = vld [vmem:[%s2387_s18 + $0x88] sm:$0xff] }
  0x95   : > { %755 = vmatpush1.bf16.msra.mxu0 %v2008_v48  ;;  %868 = vmatpush1.bf16.msra.mxu1 %v2009_v49  ;;  %v2057_v48 = vld [vmem:[#allocation6 + $0xa8] sm:$0xff]   ;;  %v2058_v49 = vld [vmem:[#allocation6 + $0x70] sm:$0xff]  }
  0x96   : > { %756 = vmatprep.subr.bf16.mxu0 %v2010_v51  ;;  %869 = vmatprep.subr.bf16.mxu1 %v2012_v52  ;;  %v316_v51 = vpack.c.bf16 %v292_v44, %v290_v43  ;;  %v319_v52 = vpack.c.bf16 %v297_v46, %v295_v45 }
  0x99   : > { %757 = vmatpush1.bf16.msra.mxu0 %v2014_v53  ;;  %870 = vmatpush1.bf16.msra.mxu1 %v2015_v54  ;;  %v2059_v53 = vld [vmem:[#allocation6 + $0x30] sm:$0xff]  }
  0x9a   : > { %758 = vmatprep.subr.bf16.mxu0 %v2016_v55  ;;  %871 = vmatprep.subr.bf16.mxu1 %v2018_v56  ;;  %v2061_v54 = vld [vmem:[#allocation6 + $0xb0] sm:$0xff]   ;;  %v294_v55 = vld [vmem:[%s2387_s18 + $0x80] sm:$0xff] }
  0x9b   : > { %v296_v56 = vld [vmem:[%s2387_s18 + $0x90] sm:$0xff] }
  0x9d   : > { %759 = vmatpush1.bf16.msra.mxu0 %v2020_v57  ;;  %872 = vmatpush1.bf16.msra.mxu1 %v2021_v58  ;;  %v299_v57 = vld [vmem:[%s2387_s18 + $0xa8] sm:$0xff]  ;;  %v301_v58 = vld [vmem:[%s2387_s18 + $0xb8] sm:$0xff] }
  0x9e   : > { %760 = vmatprep.subr.bf16.mxu0 %v2022_v59  ;;  %873 = vmatprep.subr.bf16.mxu1 %v2024_v60  ;;  %v318_v59 = vpack.c.bf16 %v296_v56, %v294_v55  ;;  %v321_v60 = vpack.c.bf16 %v301_v58, %v299_v57 }
  0xa1   : > { %761 = vmatpush1.bf16.msra.mxu0 %v2026_v61  ;;  %874 = vmatpush1.bf16.msra.mxu1 %v2027_v62  ;;  %v298_v61 = vld [vmem:[%s2387_s18 + $0xa0] sm:$0xff]  ;;  %v300_v62 = vld [vmem:[%s2387_s18 + $0xb0] sm:$0xff] }
  0xa2   : > { %762 = vmatprep.subr.bf16.mxu0 %v2028_v63  ;;  %875 = vmatprep.subr.bf16.mxu1 %v2030_v0  ;;  %v303_v63 = vld [vmem:[%s2387_s18 + $0xc8] sm:$0xff]  ;;  %v305_v0 = vld [vmem:[%s2387_s18 + $0xd8] sm:$0xff] }
  0xa5   : > { %763 = vmatpush1.bf16.msra.mxu0 %v2032_v1  ;;  %876 = vmatpush1.bf16.msra.mxu1 %v2033_v2  ;;  %v320_v1 = vpack.c.bf16 %v300_v62, %v298_v61  ;;  %v323_v2 = vpack.c.bf16 %v305_v0, %v303_v63 }
  0xa6   : > { %1746 = vmatprep.subr.bf16.mxu0 %v2034_v7  ;;  %1810 = vmatprep.subr.bf16.mxu1 %v2036_v8  ;;  %v322_v7 = vpack.c.bf16 %v304_v4, %v302_v3  ;;  %v325_v8 = vpack.c.bf16 %v309_v6, %v307_v5 }
  0xa8   : > { %765 = vmatmul.mubr.bf16.vlgmr.msra.gmra.mrb[0].mxu0 %v310_v9  ;;  %878 = vmatmul.mubr.bf16.vlgmr.msra.gmra.mrb[0].mxu1 %v310_v9  ;;  %v306_v9 = vld [vmem:[%s2387_s18 + $0xe0] sm:$0xff] }
  0xa9   : > { %774 = vmatprep.mubr.bf16.mxu0 %v313_v11  ;;  %887 = vmatprep.mubr.bf16.mxu1 %v313_v11 }
  0xaa   : > { %1747 = vmatpush3.bf16.msra.mxu0 %v2035_v10  ;;  %1811 = vmatpush3.bf16.msra.mxu1 %v2037_v12  ;;  %v308_v10 = vld [vmem:[%s2387_s18 + $0xf0] sm:$0xff]  ;;  %v2062_v12 = vld [vmem:[#allocation6 + $0x78] sm:$0xff]  }
  0xab   : > { %1748 = vmatprep.subr.bf16.mxu0 %v2038_v13  ;;  %1812 = vmatprep.subr.bf16.mxu1 %v2040_v16  ;;  %v324_v11 = vpack.c.bf16 %v308_v10, %v306_v9  ;;  %v2064_v13 = vld [vmem:[#allocation6 + $0xf8] sm:$0xff]   ;;  %v392_v16 = vlaneseq }
  0xad   : > { %v393_v17 = vshrl.u32 %v392_v16, 7 }
  0xae   : > { %1749 = vmatpush3.bf16.msra.mxu0 %v2039_v19  ;;  %1813 = vmatpush3.bf16.msra.mxu1 %v2041_v20  ;;  %v390_v20 = vld [vmem:[%s2563_s2] sm:$0xf] }
  0xaf   : > { %1750 = vmatprep.subr.bf16.mxu0 %v2042_v21  ;;  %1814 = vmatprep.subr.bf16.mxu1 %v2044_v22  ;;  %v394_v18 = vsub.s32 0, %v393_v17  ;;  %v402_v19 = vsub.s32 2, %v393_v17  ;;  %v398_v21 = vsub.s32 1, %v393_v17  ;;  %v406_v22 = vsub.s32 3, %v393_v17 }
  0xb0   : > { %775 = vmatmul.mubr.bf16.gmra.mrb[4].mxu0 %v312_v23  ;;  %888 = vmatmul.mubr.bf16.gmra.mrb[4].mxu1 %v312_v23 }
  0xb1   : > { %784 = vmatprep.mubr.bf16.mxu0 %v315_v25  ;;  %897 = vmatprep.mubr.bf16.mxu1 %v315_v25  ;;  %v2432_v23 = vrot.slane %v390_v20, %v394_v18  ;;  %v2436_v25 = vrot.slane %v390_v20, %v398_v21 }
  0xb2   : > { %1751 = vmatpush3.bf16.msra.mxu0 %v2043_v24  ;;  %1815 = vmatpush3.bf16.msra.mxu1 %v2045_v26  ;;  %v2434_v24 = vrot.slane %v390_v20, %v402_v19  ;;  %v2438_v26 = vrot.slane %v390_v20, %v406_v22 }
  0xb3   : > { %1752 = vmatprep.subr.bf16.mxu0 %v2046_v27  ;;  %1816 = vmatprep.subr.bf16.mxu1 %v2048_v30 }
  0xb6   : > { %1753 = vmatpush3.bf16.msra.mxu0 %v2047_v33  ;;  %1817 = vmatpush3.bf16.msra.mxu1 %v2049_v34 }
  0xb7   : > { %1754 = vmatprep.subr.bf16.mxu0 %v2050_v35  ;;  %1818 = vmatprep.subr.bf16.mxu1 %v2052_v36 }
  0xb8   : > { %785 = vmatmul.mubr.bf16.gmra.mrb[8].mxu0 %v314_v37  ;;  %898 = vmatmul.mubr.bf16.gmra.mrb[8].mxu1 %v314_v37 }
  0xb9   : > { %794 = vmatprep.mubr.bf16.mxu0 %v317_v39  ;;  %907 = vmatprep.mubr.bf16.mxu1 %v317_v39 }
  0xba   : > { %1755 = vmatpush3.bf16.msra.mxu0 %v2051_v38  ;;  %1819 = vmatpush3.bf16.msra.mxu1 %v2053_v40 }
  0xbb   : > { %1756 = vmatprep.subr.bf16.mxu0 %v2054_v41  ;;  %1820 = vmatprep.subr.bf16.mxu1 %v2056_v42 }
  0xbe   : > { %1757 = vmatpush3.bf16.msra.mxu0 %v2055_v47  ;;  %1821 = vmatpush3.bf16.msra.mxu1 %v2057_v48 }
  0xbf   : > { %1758 = vmatprep.subr.bf16.mxu0 %v2058_v49  ;;  %1822 = vmatprep.subr.bf16.mxu1 %v2060_v50 }
  0xc0   : > { %795 = vmatmul.mubr.bf16.gmra.mrb[12].mxu0 %v316_v51  ;;  %908 = vmatmul.mubr.bf16.gmra.mrb[12].mxu1 %v316_v51 }
  0xc1   : > { %804 = vmatprep.mubr.bf16.mxu0 %v319_v52  ;;  %917 = vmatprep.mubr.bf16.mxu1 %v319_v52 }
  0xc2   : > { %1759 = vmatpush3.bf16.msra.mxu0 %v2059_v53  ;;  %1823 = vmatpush3.bf16.msra.mxu1 %v2061_v54 }
  0xc3   : > { %1760 = vmatprep.subr.bf16.mxu0 %v2062_v12  ;;  %1824 = vmatprep.subr.bf16.mxu1 %v2064_v13 }
  0xc6   : > { %1761 = vmatpush3.bf16.msra.mxu0 %v2063_v14  ;;  %1825 = vmatpush3.bf16.msra.mxu1 %v2065_v15 }
  0xc8   : > { %805 = vmatmul.mubr.bf16.gmra.mrb[16].mxu0 %v318_v59  ;;  %918 = vmatmul.mubr.bf16.gmra.mrb[16].mxu1 %v318_v59 }
  0xc9   : > { %814 = vmatprep.mubr.bf16.mxu0 %v321_v60  ;;  %927 = vmatprep.mubr.bf16.mxu1 %v321_v60 }
  0xd0   : > { %815 = vmatmul.mubr.bf16.gmra.mrb[20].mxu0 %v320_v1  ;;  %928 = vmatmul.mubr.bf16.gmra.mrb[20].mxu1 %v320_v1 }
  0xd1   : > { %824 = vmatprep.mubr.bf16.mxu0 %v323_v2  ;;  %937 = vmatprep.mubr.bf16.mxu1 %v323_v2 }
  0xd8   : > { %825 = vmatmul.mubr.bf16.gmra.mrb[24].mxu0 %v322_v7  ;;  %938 = vmatmul.mubr.bf16.gmra.mrb[24].mxu1 %v322_v7 }
  0xd9   : > { %834 = vmatprep.mubr.bf16.mxu0 %v325_v8  ;;  %947 = vmatprep.mubr.bf16.mxu1 %v325_v8 }
  0xe0   : > { %835 = vmatmul.mubr.bf16.gmra.mrb[28].mxu0 %v324_v11  ;;  %948 = vmatmul.mubr.bf16.gmra.mrb[28].mxu1 %v324_v11 }
 0x17b   : > { %v766_v27 = vpop.f32.mrb[0].mxu0  ;;  %v879_v28 = vpop.f32.mrb[0].mxu1 }
 0x17c   : > { %v767_v29 = vadd.f32 %v766_v27, %v2432_v23  ;;  %v880_v30 = vadd.f32 %v879_v28, %v2434_v24  ;;  %v768_v31 = vpop.f32.mrb[1].mxu0  ;;  %v881_v32 = vpop.f32.mrb[1].mxu1 }
 0x17d   : > { %v769_v33 = vadd.f32 %v768_v31, %v2436_v25  ;;  %v882_v34 = vadd.f32 %v881_v32, %v2438_v26  ;;  %v770_v35 = vpop.f32.mrb[2].mxu0  ;;  %v883_v36 = vpop.f32.mrb[2].mxu1 }
 0x17e   : > { %v960_v37 = vmax.f32 %v880_v30, 0.0  ;;  %v771_v38 = vadd.f32 %v770_v35, %v2432_v23  ;;  %v884_v39 = vadd.f32 %v883_v36, %v2434_v24  ;;  %v772_v40 = vpop.f32.mrb[3].mxu0  ;;  %v885_v41 = vpop.f32.mrb[3].mxu1  ;;  %v958_v45 = vmax.f32 %v767_v29, 0.0 }
 0x17f   : > { %v961_v42 = vmax.f32 %v882_v34, 0.0  ;;  %v773_v43 = vadd.f32 %v772_v40, %v2436_v25  ;;  %v886_v44 = vadd.f32 %v885_v41, %v2438_v26  ;;  %v959_v48 = vmax.f32 %v769_v33, 0.0 }
 0x180   : > { %v962_v46 = vmax.f32 %v771_v38, 0.0  ;;  %v964_v47 = vmax.f32 %v884_v39, 0.0 }
 0x181   : > { %v963_v49 = vmax.f32 %v773_v43, 0.0  ;;  %v965_v50 = vmax.f32 %v886_v44, 0.0 }
 0x182   : > { %v1022_v51 = vpack.c.bf16 %v962_v46, %v958_v45  ;;  %v1024_v52 = vpack.c.bf16 %v964_v47, %v960_v37 }
 0x183   : > { %v1023_v53 = vpack.c.bf16 %v963_v49, %v959_v48  ;;  %v1025_v54 = vpack.c.bf16 %v965_v50, %v961_v42  ;;  %v776_v55 = vpop.f32.mrb[4].mxu0  ;;  %v889_v56 = vpop.f32.mrb[4].mxu1 }
 0x184   : > { %v777_v57 = vadd.f32 %v776_v55, %v2432_v23  ;;  %v890_v58 = vadd.f32 %v889_v56, %v2434_v24  ;;  %v778_v59 = vpop.f32.mrb[5].mxu0  ;;  %v891_v60 = vpop.f32.mrb[5].mxu1 }
 0x185   : > { %v779_v61 = vadd.f32 %v778_v59, %v2436_v25  ;;  %v892_v62 = vadd.f32 %v891_v60, %v2438_v26  ;;  %v780_v63 = vpop.f32.mrb[6].mxu0  ;;  %v893_v0 = vpop.f32.mrb[6].mxu1  ;;  %1349 = vmatprep.mubr.bf16.mxu0 %v1023_v53  ;;  %1446 = vmatprep.mubr.bf16.mxu1 %v1025_v54 }
 0x186   : > { %v968_v1 = vmax.f32 %v890_v58, 0.0  ;;  %v781_v2 = vadd.f32 %v780_v63, %v2432_v23  ;;  %v894_v3 = vadd.f32 %v893_v0, %v2434_v24  ;;  %v782_v4 = vpop.f32.mrb[7].mxu0  ;;  %v895_v5 = vpop.f32.mrb[7].mxu1  ;;  %1350 = vmatmul.mubr.bf16.vlgmr.msra.gmra.mrb[32].mxu0 %v1022_v51  ;;  %1447 = vmatmul.mubr.bf16.vlgmr.msra.gmra.mrb[32].mxu1 %v1024_v52  ;;  %v966_v9 = vmax.f32 %v777_v57, 0.0 }
 0x187   : > { %v969_v6 = vmax.f32 %v892_v62, 0.0  ;;  %v783_v7 = vadd.f32 %v782_v4, %v2436_v25  ;;  %v896_v8 = vadd.f32 %v895_v5, %v2438_v26  ;;  %v967_v12 = vmax.f32 %v779_v61, 0.0 }
 0x188   : > { %v970_v10 = vmax.f32 %v781_v2, 0.0  ;;  %v972_v11 = vmax.f32 %v894_v3, 0.0 }
 0x189   : > { %v971_v13 = vmax.f32 %v783_v7, 0.0  ;;  %v973_v14 = vmax.f32 %v896_v8, 0.0 }
 0x18a   : > { %v1026_v15 = vpack.c.bf16 %v970_v10, %v966_v9  ;;  %v1028_v16 = vpack.c.bf16 %v972_v11, %v968_v1 }
 0x18b   : > { %v1027_v17 = vpack.c.bf16 %v971_v13, %v967_v12  ;;  %v1029_v18 = vpack.c.bf16 %v973_v14, %v969_v6  ;;  %v786_v19 = vpop.f32.mrb[8].mxu0  ;;  %v899_v20 = vpop.f32.mrb[8].mxu1 }
 0x18c   : > { %v787_v21 = vadd.f32 %v786_v19, %v2432_v23  ;;  %v900_v22 = vadd.f32 %v899_v20, %v2434_v24  ;;  %v788_v27 = vpop.f32.mrb[9].mxu0  ;;  %v901_v28 = vpop.f32.mrb[9].mxu1 }
 0x18d   : > { %v789_v29 = vadd.f32 %v788_v27, %v2436_v25  ;;  %v902_v30 = vadd.f32 %v901_v28, %v2438_v26  ;;  %v790_v31 = vpop.f32.mrb[10].mxu0  ;;  %v903_v32 = vpop.f32.mrb[10].mxu1  ;;  %1357 = vmatprep.mubr.bf16.mxu0 %v1027_v17  ;;  %1454 = vmatprep.mubr.bf16.mxu1 %v1029_v18 }
 0x18e   : > { %v976_v33 = vmax.f32 %v900_v22, 0.0  ;;  %v791_v34 = vadd.f32 %v790_v31, %v2432_v23  ;;  %v904_v35 = vadd.f32 %v903_v32, %v2434_v24  ;;  %v792_v36 = vpop.f32.mrb[11].mxu0  ;;  %v905_v37 = vpop.f32.mrb[11].mxu1  ;;  %1358 = vmatmul.mubr.bf16.gmra.mrb[36].mxu0 %v1026_v15  ;;  %1455 = vmatmul.mubr.bf16.gmra.mrb[36].mxu1 %v1028_v16  ;;  %v974_v41 = vmax.f32 %v787_v21, 0.0 }
 0x18f   : > { %v977_v38 = vmax.f32 %v902_v30, 0.0  ;;  %v793_v39 = vadd.f32 %v792_v36, %v2436_v25  ;;  %v906_v40 = vadd.f32 %v905_v37, %v2438_v26  ;;  %v975_v44 = vmax.f32 %v789_v29, 0.0 }
 0x190   : > { %v978_v42 = vmax.f32 %v791_v34, 0.0  ;;  %v980_v43 = vmax.f32 %v904_v35, 0.0 }
 0x191   : > { %v979_v45 = vmax.f32 %v793_v39, 0.0  ;;  %v981_v46 = vmax.f32 %v906_v40, 0.0 }
 0x192   : > { %v1030_v47 = vpack.c.bf16 %v978_v42, %v974_v41  ;;  %v1032_v48 = vpack.c.bf16 %v980_v43, %v976_v33 }
 0x193   : > { %v1031_v49 = vpack.c.bf16 %v979_v45, %v975_v44  ;;  %v1033_v50 = vpack.c.bf16 %v981_v46, %v977_v38  ;;  %v796_v51 = vpop.f32.mrb[12].mxu0  ;;  %v909_v52 = vpop.f32.mrb[12].mxu1 }
 0x194   : > { %v797_v53 = vadd.f32 %v796_v51, %v2432_v23  ;;  %v910_v54 = vadd.f32 %v909_v52, %v2434_v24  ;;  %v798_v55 = vpop.f32.mrb[13].mxu0  ;;  %v911_v56 = vpop.f32.mrb[13].mxu1 }
 0x195   : > { %v799_v57 = vadd.f32 %v798_v55, %v2436_v25  ;;  %v912_v58 = vadd.f32 %v911_v56, %v2438_v26  ;;  %v800_v59 = vpop.f32.mrb[14].mxu0  ;;  %v913_v60 = vpop.f32.mrb[14].mxu1  ;;  %1365 = vmatprep.mubr.bf16.mxu0 %v1031_v49  ;;  %1462 = vmatprep.mubr.bf16.mxu1 %v1033_v50 }
 0x196   : > { %v984_v61 = vmax.f32 %v910_v54, 0.0  ;;  %v801_v62 = vadd.f32 %v800_v59, %v2432_v23  ;;  %v914_v63 = vadd.f32 %v913_v60, %v2434_v24  ;;  %v802_v0 = vpop.f32.mrb[15].mxu0  ;;  %v915_v1 = vpop.f32.mrb[15].mxu1  ;;  %1366 = vmatmul.mubr.bf16.gmra.mrb[40].mxu0 %v1030_v47  ;;  %1463 = vmatmul.mubr.bf16.gmra.mrb[40].mxu1 %v1032_v48  ;;  %v982_v5 = vmax.f32 %v797_v53, 0.0 }
 0x197   : > { %v985_v2 = vmax.f32 %v912_v58, 0.0  ;;  %v803_v3 = vadd.f32 %v802_v0, %v2436_v25  ;;  %v916_v4 = vadd.f32 %v915_v1, %v2438_v26  ;;  %v983_v8 = vmax.f32 %v799_v57, 0.0 }
 0x198   : > { %v986_v6 = vmax.f32 %v801_v62, 0.0  ;;  %v988_v7 = vmax.f32 %v914_v63, 0.0 }
 0x199   : > { %v987_v9 = vmax.f32 %v803_v3, 0.0  ;;  %v989_v10 = vmax.f32 %v916_v4, 0.0 }
 0x19a   : > { %v1034_v11 = vpack.c.bf16 %v986_v6, %v982_v5  ;;  %v1036_v12 = vpack.c.bf16 %v988_v7, %v984_v61 }
 0x19b   : > { %v1035_v13 = vpack.c.bf16 %v987_v9, %v983_v8  ;;  %v1037_v14 = vpack.c.bf16 %v989_v10, %v985_v2  ;;  %v806_v15 = vpop.f32.mrb[16].mxu0  ;;  %v919_v16 = vpop.f32.mrb[16].mxu1 }
 0x19c   : > { %v807_v17 = vadd.f32 %v806_v15, %v2432_v23  ;;  %v920_v18 = vadd.f32 %v919_v16, %v2434_v24  ;;  %v808_v19 = vpop.f32.mrb[17].mxu0  ;;  %v921_v20 = vpop.f32.mrb[17].mxu1 }
 0x19d   : > { %v809_v21 = vadd.f32 %v808_v19, %v2436_v25  ;;  %v922_v22 = vadd.f32 %v921_v20, %v2438_v26  ;;  %v810_v27 = vpop.f32.mrb[18].mxu0  ;;  %v923_v28 = vpop.f32.mrb[18].mxu1  ;;  %1373 = vmatprep.mubr.bf16.mxu0 %v1035_v13  ;;  %1470 = vmatprep.mubr.bf16.mxu1 %v1037_v14 }
 0x19e   : > { %v992_v29 = vmax.f32 %v920_v18, 0.0  ;;  %v811_v30 = vadd.f32 %v810_v27, %v2432_v23  ;;  %v924_v31 = vadd.f32 %v923_v28, %v2434_v24  ;;  %v812_v32 = vpop.f32.mrb[19].mxu0  ;;  %v925_v33 = vpop.f32.mrb[19].mxu1  ;;  %1374 = vmatmul.mubr.bf16.gmra.mrb[44].mxu0 %v1034_v11  ;;  %1471 = vmatmul.mubr.bf16.gmra.mrb[44].mxu1 %v1036_v12  ;;  %v990_v37 = vmax.f32 %v807_v17, 0.0 }
 0x19f   : > { %v993_v34 = vmax.f32 %v922_v22, 0.0  ;;  %v813_v35 = vadd.f32 %v812_v32, %v2436_v25  ;;  %v926_v36 = vadd.f32 %v925_v33, %v2438_v26  ;;  %v991_v40 = vmax.f32 %v809_v21, 0.0 }
 0x1a0   : > { %v994_v38 = vmax.f32 %v811_v30, 0.0  ;;  %v996_v39 = vmax.f32 %v924_v31, 0.0 }
 0x1a1   : > { %v995_v41 = vmax.f32 %v813_v35, 0.0  ;;  %v997_v42 = vmax.f32 %v926_v36, 0.0 }
 0x1a2   : > { %v1038_v43 = vpack.c.bf16 %v994_v38, %v990_v37  ;;  %v1040_v44 = vpack.c.bf16 %v996_v39, %v992_v29 }
 0x1a3   : > { %v1039_v45 = vpack.c.bf16 %v995_v41, %v991_v40  ;;  %v1041_v46 = vpack.c.bf16 %v997_v42, %v993_v34  ;;  %v816_v47 = vpop.f32.mrb[20].mxu0  ;;  %v929_v48 = vpop.f32.mrb[20].mxu1 }
 0x1a4   : > { %v817_v49 = vadd.f32 %v816_v47, %v2432_v23  ;;  %v930_v50 = vadd.f32 %v929_v48, %v2434_v24  ;;  %v818_v51 = vpop.f32.mrb[21].mxu0  ;;  %v931_v52 = vpop.f32.mrb[21].mxu1 }
 0x1a5   : > { %v819_v53 = vadd.f32 %v818_v51, %v2436_v25  ;;  %v932_v54 = vadd.f32 %v931_v52, %v2438_v26  ;;  %v820_v55 = vpop.f32.mrb[22].mxu0  ;;  %v933_v56 = vpop.f32.mrb[22].mxu1  ;;  %1381 = vmatprep.mubr.bf16.mxu0 %v1039_v45  ;;  %1478 = vmatprep.mubr.bf16.mxu1 %v1041_v46 }
 0x1a6   : > { %v1000_v57 = vmax.f32 %v930_v50, 0.0  ;;  %v821_v58 = vadd.f32 %v820_v55, %v2432_v23  ;;  %v934_v59 = vadd.f32 %v933_v56, %v2434_v24  ;;  %v822_v60 = vpop.f32.mrb[23].mxu0  ;;  %v935_v61 = vpop.f32.mrb[23].mxu1  ;;  %1382 = vmatmul.mubr.bf16.gmra.mrb[48].mxu0 %v1038_v43  ;;  %1479 = vmatmul.mubr.bf16.gmra.mrb[48].mxu1 %v1040_v44  ;;  %v998_v1 = vmax.f32 %v817_v49, 0.0 }
 0x1a7   : > { %v1001_v62 = vmax.f32 %v932_v54, 0.0  ;;  %v823_v63 = vadd.f32 %v822_v60, %v2436_v25  ;;  %v936_v0 = vadd.f32 %v935_v61, %v2438_v26  ;;  %v999_v4 = vmax.f32 %v819_v53, 0.0 }
 0x1a8   : > { %v1002_v2 = vmax.f32 %v821_v58, 0.0  ;;  %v1004_v3 = vmax.f32 %v934_v59, 0.0 }
 0x1a9   : > { %v1003_v5 = vmax.f32 %v823_v63, 0.0  ;;  %v1005_v6 = vmax.f32 %v936_v0, 0.0 }
 0x1aa   : > { %v1042_v7 = vpack.c.bf16 %v1002_v2, %v998_v1  ;;  %v1044_v8 = vpack.c.bf16 %v1004_v3, %v1000_v57 }
 0x1ab   : > { %v1043_v9 = vpack.c.bf16 %v1003_v5, %v999_v4  ;;  %v1045_v10 = vpack.c.bf16 %v1005_v6, %v1001_v62  ;;  %v826_v11 = vpop.f32.mrb[24].mxu0  ;;  %v939_v12 = vpop.f32.mrb[24].mxu1 }
 0x1ac   : > { %v827_v13 = vadd.f32 %v826_v11, %v2432_v23  ;;  %v940_v14 = vadd.f32 %v939_v12, %v2434_v24  ;;  %v828_v15 = vpop.f32.mrb[25].mxu0  ;;  %v941_v16 = vpop.f32.mrb[25].mxu1 }
 0x1ad   : > { %v829_v17 = vadd.f32 %v828_v15, %v2436_v25  ;;  %v942_v18 = vadd.f32 %v941_v16, %v2438_v26  ;;  %v830_v19 = vpop.f32.mrb[26].mxu0  ;;  %v943_v20 = vpop.f32.mrb[26].mxu1  ;;  %1389 = vmatprep.mubr.bf16.mxu0 %v1043_v9  ;;  %1486 = vmatprep.mubr.bf16.mxu1 %v1045_v10 }
 0x1ae   : > { %v1008_v21 = vmax.f32 %v940_v14, 0.0  ;;  %v831_v22 = vadd.f32 %v830_v19, %v2432_v23  ;;  %v944_v27 = vadd.f32 %v943_v20, %v2434_v24  ;;  %v832_v28 = vpop.f32.mrb[27].mxu0  ;;  %v945_v29 = vpop.f32.mrb[27].mxu1  ;;  %1390 = vmatmul.mubr.bf16.gmra.mrb[52].mxu0 %v1042_v7  ;;  %1487 = vmatmul.mubr.bf16.gmra.mrb[52].mxu1 %v1044_v8  ;;  %v1006_v33 = vmax.f32 %v827_v13, 0.0 }
 0x1af   : > { %v1009_v30 = vmax.f32 %v942_v18, 0.0  ;;  %v833_v31 = vadd.f32 %v832_v28, %v2436_v25  ;;  %v946_v32 = vadd.f32 %v945_v29, %v2438_v26  ;;  %v1007_v36 = vmax.f32 %v829_v17, 0.0 }
 0x1b0   : > { %v1010_v34 = vmax.f32 %v831_v22, 0.0  ;;  %v1012_v35 = vmax.f32 %v944_v27, 0.0 }
 0x1b1   : > { %v1011_v37 = vmax.f32 %v833_v31, 0.0  ;;  %v1013_v38 = vmax.f32 %v946_v32, 0.0 }
 0x1b2   : > { %v1046_v39 = vpack.c.bf16 %v1010_v34, %v1006_v33  ;;  %v1048_v40 = vpack.c.bf16 %v1012_v35, %v1008_v21 }
 0x1b3   : > { %v1047_v41 = vpack.c.bf16 %v1011_v37, %v1007_v36  ;;  %v1049_v42 = vpack.c.bf16 %v1013_v38, %v1009_v30  ;;  %v836_v43 = vpop.f32.mrb[28].mxu0  ;;  %v949_v44 = vpop.f32.mrb[28].mxu1 }
 0x1b4   : > { %v837_v45 = vadd.f32 %v836_v43, %v2432_v23  ;;  %v950_v46 = vadd.f32 %v949_v44, %v2434_v24  ;;  %v838_v47 = vpop.f32.mrb[29].mxu0  ;;  %v951_v48 = vpop.f32.mrb[29].mxu1 }
 0x1b5   : > { %v839_v49 = vadd.f32 %v838_v47, %v2436_v25  ;;  %v952_v50 = vadd.f32 %v951_v48, %v2438_v26  ;;  %v840_v51 = vpop.f32.mrb[30].mxu0  ;;  %v953_v52 = vpop.f32.mrb[30].mxu1  ;;  %1397 = vmatprep.mubr.bf16.mxu0 %v1047_v41  ;;  %1494 = vmatprep.mubr.bf16.mxu1 %v1049_v42 }
 0x1b6   : > { %v1016_v53 = vmax.f32 %v950_v46, 0.0  ;;  %v841_v54 = vadd.f32 %v840_v51, %v2432_v23  ;;  %v954_v55 = vadd.f32 %v953_v52, %v2434_v24  ;;  %v842_v56 = vpop.f32.mrb[31].mxu0  ;;  %v955_v57 = vpop.f32.mrb[31].mxu1  ;;  %1398 = vmatmul.mubr.bf16.gmra.mrb[56].mxu0 %v1046_v39  ;;  %1495 = vmatmul.mubr.bf16.gmra.mrb[56].mxu1 %v1048_v40  ;;  %v1014_v61 = vmax.f32 %v837_v45, 0.0 }
 0x1b7   : > { %v1017_v58 = vmax.f32 %v952_v50, 0.0  ;;  %v843_v59 = vadd.f32 %v842_v56, %v2436_v25  ;;  %v956_v60 = vadd.f32 %v955_v57, %v2438_v26  ;;  %v1015_v0 = vmax.f32 %v839_v49, 0.0  ;;  %v2509_v26 = vld [vmem:[%s2565_s4] ss:$0 sm:$0xff] }
 0x1b8   : > { %v1018_v62 = vmax.f32 %v841_v54, 0.0  ;;  %v1020_v63 = vmax.f32 %v954_v55, 0.0 }
 0x1b9   : > { %v1019_v1 = vmax.f32 %v843_v59, 0.0  ;;  %v1021_v2 = vmax.f32 %v956_v60, 0.0 }
 0x1ba   : > { %v1050_v3 = vpack.c.bf16 %v1018_v62, %v1014_v61  ;;  %v1052_v23 = vpack.c.bf16 %v1020_v63, %v1016_v53 }
 0x1bb   : > { %v1051_v4 = vpack.c.bf16 %v1019_v1, %v1015_v0  ;;  %v1053_v24 = vpack.c.bf16 %v1021_v2, %v1017_v58 }
 0x1bd   : > { %1405 = vmatprep.mubr.bf16.mxu0 %v1051_v4  ;;  %1502 = vmatprep.mubr.bf16.mxu1 %v1053_v24 }
 0x1be   : > { %1406 = vmatmul.mubr.bf16.gmra.mrb[60].mxu0 %v1050_v3  ;;  %1503 = vmatmul.mubr.bf16.gmra.mrb[60].mxu1 %v1052_v23 }
 0x259   : > { %v1762_v25 = vpop.f32.mrb[32].mxu0  ;;  %v1826_v5 = vpop.f32.mrb[32].mxu1 }
 0x25a   : > { %v1763_v6 = vpop.f32.mrb[33].mxu0  ;;  %v1827_v7 = vpop.f32.mrb[33].mxu1 }
 0x25b   : > { %v1764_v8 = vadd.f32 %v1763_v6, %v1762_v25  ;;  %v1828_v9 = vadd.f32 %v1827_v7, %v1826_v5  ;;  %v1765_v10 = vpop.f32.mrb[34].mxu0  ;;  %v1829_v11 = vpop.f32.mrb[34].mxu1 }
 0x25c   : > { %v1766_v12 = vpop.f32.mrb[35].mxu0  ;;  %v1830_v13 = vpop.f32.mrb[35].mxu1 }
 0x25d   : > { %v1352_v14 = vadd.f32 %v1764_v8, %v2509_v26  ;;  %v1767_v15 = vadd.f32 %v1766_v12, %v1765_v10  ;;  %v1831_v16 = vadd.f32 %v1830_v13, %v1829_v11 }
 0x25f   : > { %v1449_v17 = vadd.f32 %v1828_v9, %v1352_v14  ;;  %v1355_v18 = vadd.f32 %v1767_v15, %v2509_v26 }
 0x261   : > { %v1511_v19 = vmax.f32 %v1449_v17, 0.0  ;;  %v1452_v20 = vadd.f32 %v1831_v16, %v1355_v18  ;;  %v1768_v21 = vpop.f32.mrb[36].mxu0  ;;  %v1832_v22 = vpop.f32.mrb[36].mxu1 }
 0x262   : > { %v1769_v27 = vpop.f32.mrb[37].mxu0  ;;  %v1833_v28 = vpop.f32.mrb[37].mxu1 }
 0x263   : > { %1527 = vst [vmem:[%s2516_s27] sm:$0xff] %v1511_v19  ;;  %v1512_v29 = vmax.f32 %v1452_v20, 0.0  ;;  %v1770_v30 = vadd.f32 %v1769_v27, %v1768_v21  ;;  %v1834_v31 = vadd.f32 %v1833_v28, %v1832_v22  ;;  %v1771_v32 = vpop.f32.mrb[38].mxu0  ;;  %v1835_v33 = vpop.f32.mrb[38].mxu1 }
 0x264   : > { %v1772_v34 = vpop.f32.mrb[39].mxu0  ;;  %v1836_v35 = vpop.f32.mrb[39].mxu1 }
 0x265   : > { %1528 = vst [vmem:[%s2516_s27 + $0x8] sm:$0xff] %v1512_v29  ;;  %v1360_v36 = vadd.f32 %v1770_v30, %v2509_v26  ;;  %v1773_v37 = vadd.f32 %v1772_v34, %v1771_v32  ;;  %v1837_v38 = vadd.f32 %v1836_v35, %v1835_v33 }
 0x267   : > { %v1457_v39 = vadd.f32 %v1834_v31, %v1360_v36  ;;  %v1363_v40 = vadd.f32 %v1773_v37, %v2509_v26 }
 0x269   : > { %v1513_v41 = vmax.f32 %v1457_v39, 0.0  ;;  %v1460_v42 = vadd.f32 %v1837_v38, %v1363_v40  ;;  %v1774_v43 = vpop.f32.mrb[40].mxu0  ;;  %v1838_v44 = vpop.f32.mrb[40].mxu1 }
 0x26a   : > { %v1775_v45 = vpop.f32.mrb[41].mxu0  ;;  %v1839_v46 = vpop.f32.mrb[41].mxu1 }
 0x26b   : > { %1529 = vst [vmem:[%s2516_s27 + $0x10] sm:$0xff] %v1513_v41  ;;  %v1514_v47 = vmax.f32 %v1460_v42, 0.0  ;;  %v1776_v48 = vadd.f32 %v1775_v45, %v1774_v43  ;;  %v1840_v49 = vadd.f32 %v1839_v46, %v1838_v44  ;;  %v1777_v50 = vpop.f32.mrb[42].mxu0  ;;  %v1841_v51 = vpop.f32.mrb[42].mxu1 }
 0x26c   : > { %v1778_v52 = vpop.f32.mrb[43].mxu0  ;;  %v1842_v53 = vpop.f32.mrb[43].mxu1 }
 0x26d   : > { %1530 = vst [vmem:[%s2516_s27 + $0x18] sm:$0xff] %v1514_v47  ;;  %v1368_v54 = vadd.f32 %v1776_v48, %v2509_v26  ;;  %v1779_v55 = vadd.f32 %v1778_v52, %v1777_v50  ;;  %v1843_v56 = vadd.f32 %v1842_v53, %v1841_v51 }
 0x26f   : > { %v1465_v57 = vadd.f32 %v1840_v49, %v1368_v54  ;;  %v1371_v58 = vadd.f32 %v1779_v55, %v2509_v26 }
 0x271   : > { %v1515_v59 = vmax.f32 %v1465_v57, 0.0  ;;  %v1468_v60 = vadd.f32 %v1843_v56, %v1371_v58  ;;  %v1780_v61 = vpop.f32.mrb[44].mxu0  ;;  %v1844_v62 = vpop.f32.mrb[44].mxu1 }
 0x272   : > { %v1781_v63 = vpop.f32.mrb[45].mxu0  ;;  %v1845_v0 = vpop.f32.mrb[45].mxu1 }
 0x273   : > { %1531 = vst [vmem:[%s2516_s27 + $0x20] sm:$0xff] %v1515_v59  ;;  %v1516_v1 = vmax.f32 %v1468_v60, 0.0  ;;  %v1782_v2 = vadd.f32 %v1781_v63, %v1780_v61  ;;  %v1846_v3 = vadd.f32 %v1845_v0, %v1844_v62  ;;  %v1783_v23 = vpop.f32.mrb[46].mxu0  ;;  %v1847_v4 = vpop.f32.mrb[46].mxu1 }
 0x274   : > { %v1784_v24 = vpop.f32.mrb[47].mxu0  ;;  %v1848_v25 = vpop.f32.mrb[47].mxu1 }
 0x275   : > { %1532 = vst [vmem:[%s2516_s27 + $0x28] sm:$0xff] %v1516_v1  ;;  %v1376_v5 = vadd.f32 %v1782_v2, %v2509_v26  ;;  %v1785_v6 = vadd.f32 %v1784_v24, %v1783_v23  ;;  %v1849_v7 = vadd.f32 %v1848_v25, %v1847_v4 }
 0x277   : > { %v1473_v8 = vadd.f32 %v1846_v3, %v1376_v5  ;;  %v1379_v9 = vadd.f32 %v1785_v6, %v2509_v26 }
 0x279   : > { %v1517_v10 = vmax.f32 %v1473_v8, 0.0  ;;  %v1476_v11 = vadd.f32 %v1849_v7, %v1379_v9  ;;  %v1786_v12 = vpop.f32.mrb[48].mxu0  ;;  %v1850_v13 = vpop.f32.mrb[48].mxu1 }
 0x27a   : > { %v1787_v14 = vpop.f32.mrb[49].mxu0  ;;  %v1851_v15 = vpop.f32.mrb[49].mxu1 }
 0x27b   : > { %1533 = vst [vmem:[%s2516_s27 + $0x30] sm:$0xff] %v1517_v10  ;;  %v1518_v16 = vmax.f32 %v1476_v11, 0.0  ;;  %v1788_v17 = vadd.f32 %v1787_v14, %v1786_v12  ;;  %v1852_v18 = vadd.f32 %v1851_v15, %v1850_v13  ;;  %v1789_v19 = vpop.f32.mrb[50].mxu0  ;;  %v1853_v20 = vpop.f32.mrb[50].mxu1 }
 0x27c   : > { %v1790_v21 = vpop.f32.mrb[51].mxu0  ;;  %v1854_v22 = vpop.f32.mrb[51].mxu1 }
 0x27d   : > { %1534 = vst [vmem:[%s2516_s27 + $0x38] sm:$0xff] %v1518_v16  ;;  %v1384_v27 = vadd.f32 %v1788_v17, %v2509_v26  ;;  %v1791_v28 = vadd.f32 %v1790_v21, %v1789_v19  ;;  %v1855_v29 = vadd.f32 %v1854_v22, %v1853_v20 }
 0x27f   : > { %v1481_v30 = vadd.f32 %v1852_v18, %v1384_v27  ;;  %v1387_v31 = vadd.f32 %v1791_v28, %v2509_v26 }
 0x281   : > { %v1519_v32 = vmax.f32 %v1481_v30, 0.0  ;;  %v1484_v33 = vadd.f32 %v1855_v29, %v1387_v31  ;;  %v1792_v34 = vpop.f32.mrb[52].mxu0  ;;  %v1856_v35 = vpop.f32.mrb[52].mxu1 }
 0x282   : > { %v1793_v36 = vpop.f32.mrb[53].mxu0  ;;  %v1857_v37 = vpop.f32.mrb[53].mxu1 }
 0x283   : > { %1535 = vst [vmem:[%s2516_s27 + $0x40] sm:$0xff] %v1519_v32  ;;  %v1520_v38 = vmax.f32 %v1484_v33, 0.0  ;;  %v1794_v39 = vadd.f32 %v1793_v36, %v1792_v34  ;;  %v1858_v40 = vadd.f32 %v1857_v37, %v1856_v35  ;;  %v1795_v41 = vpop.f32.mrb[54].mxu0  ;;  %v1859_v42 = vpop.f32.mrb[54].mxu1 }
 0x284   : > { %v1796_v43 = vpop.f32.mrb[55].mxu0  ;;  %v1860_v44 = vpop.f32.mrb[55].mxu1 }
 0x285   : > { %1536 = vst [vmem:[%s2516_s27 + $0x48] sm:$0xff] %v1520_v38  ;;  %v1392_v45 = vadd.f32 %v1794_v39, %v2509_v26  ;;  %v1797_v46 = vadd.f32 %v1796_v43, %v1795_v41  ;;  %v1861_v47 = vadd.f32 %v1860_v44, %v1859_v42 }
 0x287   : > { %v1489_v48 = vadd.f32 %v1858_v40, %v1392_v45  ;;  %v1395_v49 = vadd.f32 %v1797_v46, %v2509_v26 }
 0x289   : > { %v1521_v50 = vmax.f32 %v1489_v48, 0.0  ;;  %v1492_v51 = vadd.f32 %v1861_v47, %v1395_v49  ;;  %v1798_v52 = vpop.f32.mrb[56].mxu0  ;;  %v1862_v53 = vpop.f32.mrb[56].mxu1 }
 0x28a   : > { %v1799_v54 = vpop.f32.mrb[57].mxu0  ;;  %v1863_v55 = vpop.f32.mrb[57].mxu1 }
 0x28b   : > { %1537 = vst [vmem:[%s2516_s27 + $0x50] sm:$0xff] %v1521_v50  ;;  %v1522_v56 = vmax.f32 %v1492_v51, 0.0  ;;  %v1800_v57 = vadd.f32 %v1799_v54, %v1798_v52  ;;  %v1864_v58 = vadd.f32 %v1863_v55, %v1862_v53  ;;  %v1801_v59 = vpop.f32.mrb[58].mxu0  ;;  %v1865_v60 = vpop.f32.mrb[58].mxu1 }
 0x28c   : > { %v1802_v61 = vpop.f32.mrb[59].mxu0  ;;  %v1866_v62 = vpop.f32.mrb[59].mxu1 }
 0x28d   : > { %1538 = vst [vmem:[%s2516_s27 + $0x58] sm:$0xff] %v1522_v56  ;;  %v1400_v63 = vadd.f32 %v1800_v57, %v2509_v26  ;;  %v1803_v0 = vadd.f32 %v1802_v61, %v1801_v59  ;;  %v1867_v1 = vadd.f32 %v1866_v62, %v1865_v60 }
 0x28f   : > { %v1497_v2 = vadd.f32 %v1864_v58, %v1400_v63  ;;  %v1403_v3 = vadd.f32 %v1803_v0, %v2509_v26 }
 0x291   : > { %v1523_v23 = vmax.f32 %v1497_v2, 0.0  ;;  %v1500_v4 = vadd.f32 %v1867_v1, %v1403_v3  ;;  %v1804_v24 = vpop.f32.mrb[60].mxu0  ;;  %v1868_v25 = vpop.f32.mrb[60].mxu1 }
 0x292   : > { %v1805_v5 = vpop.f32.mrb[61].mxu0  ;;  %v1869_v6 = vpop.f32.mrb[61].mxu1 }
 0x293   : > { %1539 = vst [vmem:[%s2516_s27 + $0x60] sm:$0xff] %v1523_v23  ;;  %v1524_v7 = vmax.f32 %v1500_v4, 0.0  ;;  %v1806_v8 = vadd.f32 %v1805_v5, %v1804_v24  ;;  %v1870_v9 = vadd.f32 %v1869_v6, %v1868_v25  ;;  %v1807_v10 = vpop.f32.mrb[62].mxu0  ;;  %v1871_v11 = vpop.f32.mrb[62].mxu1 }
 0x294   : > { %v1808_v12 = vpop.f32.mrb[63].mxu0  ;;  %v1872_v13 = vpop.f32.mrb[63].mxu1 }
 0x295   : > { %1540 = vst [vmem:[%s2516_s27 + $0x68] sm:$0xff] %v1524_v7  ;;  %v1408_v14 = vadd.f32 %v1806_v8, %v2509_v26  ;;  %v1809_v15 = vadd.f32 %v1808_v12, %v1807_v10  ;;  %v1873_v16 = vadd.f32 %v1872_v13, %v1871_v11 }
 0x297   : > { %v1505_v17 = vadd.f32 %v1870_v9, %v1408_v14  ;;  %v1411_v18 = vadd.f32 %v1809_v15, %v2509_v26 }
 0x299   : > { %v1525_v19 = vmax.f32 %v1505_v17, 0.0  ;;  %v1508_v20 = vadd.f32 %v1873_v16, %v1411_v18 }
 0x29b   : > { %1541 = vst [vmem:[%s2516_s27 + $0x70] sm:$0xff] %v1525_v19  ;;  %v1526_v21 = vmax.f32 %v1508_v20, 0.0 }
 0x29d   : > { %1542 = vst [vmem:[%s2516_s27 + $0x78] sm:$0xff] %v1526_v21 }
 0x29e PF: > { %p16_p6 = scmp.ge.s32.totalorder %s2328_s16, 6   ;;  %s2579_s18 = smov %s2182_s19 }
 0x29f   : > { %s2580_s19 = smov %s2186_s20  ;;  %s2581_s20 = smov %s2337_s26 }
 0x2a0   : > { %s2582_s21 = smov %s2328_s16  ;;  %18 = sbr.rel (!%p16_p6) target bundleno = 4 (0x4), region = 88 }
 0x2a7   :  { %1565 = vsyncpa [#allocation3], 1 }
 0x2a8   :  { %1567 = vsyncpa [#allocation3 + $0x1], 1 }
 0x2a9   :  { %1568 = vsyncpa [#allocation5], 1 }

</bundles_post_ra>
